<compile_context>
chip_gen: v6e
topology: v6e:2x2x1
jax: 0.10.0
libtpu: 0.0.40
codegen_flags: <defaults>
</compile_context>

<pallas_src>
import functools

import numpy as np
import jax
import jax.numpy as jnp
from jax.experimental import pallas as pl
from jax.experimental.pallas import tpu as pltpu


def _third_order_kernel(x_ref, wh_ref, wo_ref, out_ref):
    """out = ((x @ Wh) ** 3) @ Wo, fully fused in VMEM.

    x_ref:  [TM, D_in]   activation tile (compute dtype)
    wh_ref: [D_in, H]    hidden weight, pre-transposed to [K, N]
    wo_ref: [H, N_pad]   output weight, pre-transposed + lane-padded
    out_ref:[TM, N_pad]
    """
    h = jnp.dot(x_ref[...], wh_ref[...], preferred_element_type=jnp.float32)
    h3 = h * h * h  # x ** 3 on the VPU, always f32
    out_ref[...] = jnp.dot(
        h3.astype(wo_ref.dtype), wo_ref[...],
        preferred_element_type=jnp.float32).astype(out_ref.dtype)


def _pick_tile_m(B, block_m):
    """Batch tile: full block for tiny B, else sublane-friendly tiles with
    at least 2 grid steps (so v7x can shard the batch axis across its 2 TCs)."""
    if B <= 16:
        return B  # full-dim block: exempt from the (8,128) divisibility rule
    g = 16  # friendly to both f32 (8-row) and bf16 (16-row) sublane packing
    tm = g * pl.cdiv(pl.cdiv(B, 2), g)
    return min(block_m, tm)


@functools.partial(jax.jit, static_argnames=("block_m", "compute_dtype"))
def third_order_forward(x, w_hidden, w_output, *, block_m=512,
                        compute_dtype=jnp.float32):
    """Pallas-backed ThirdOrderNet forward.

    x:        [B, D_in]
    w_hidden: [H, D_in]    (torch nn.Linear weight layout)
    w_output: [D_out, H]
    """
    B, D_in = x.shape
    H = w_hidden.shape[0]
    D_out = w_output.shape[0]
    out_dtype = x.dtype

    # One-time, XLA-fused prep outside the grid loop:
    #  * transpose weights to [K, N] (no in-kernel transpose),
    #  * pad output features to a lane-dense multiple of 128,
    #  * optional bf16 MXU feed (accumulation stays f32 in-kernel).
    n_pad = 128 * pl.cdiv(D_out, 128)
    wh_t = jnp.asarray(w_hidden.T, dtype=compute_dtype)   # [D_in, H]
    wo_t = jnp.asarray(w_output.T, dtype=compute_dtype)   # [H, D_out]
    if n_pad != D_out:
        wo_t = jnp.pad(wo_t, ((0, 0), (0, n_pad - D_out)))
    x_c = jnp.asarray(x, dtype=compute_dtype)

    tm = _pick_tile_m(B, block_m)
    grid = (pl.cdiv(B, tm),)  # ragged final tile: Pallas masks the writes

    itemsize = jnp.dtype(compute_dtype).itemsize
    flops = 2 * B * D_in * H + 2 * B * H + 2 * B * H * n_pad
    bytes_accessed = (itemsize * (B * D_in + D_in * H + H * n_pad)
                      + jnp.dtype(out_dtype).itemsize * B * n_pad)

    grid_spec = pltpu.PrefetchScalarGridSpec(
        num_scalar_prefetch=0,
        grid=grid,
        in_specs=[
            pl.BlockSpec((tm, D_in), lambda i: (i, 0)),
            # Constant index_maps -> weight blocks stay VMEM-resident across
            # all grid steps.
            # TODO(synk): pipeline_mode=pl.Buffered(1) on the weight specs
            # would halve their VMEM once H*D_in grows to production size.
            pl.BlockSpec((D_in, H), lambda i: (0, 0)),
            pl.BlockSpec((H, n_pad), lambda i: (0, 0)),
        ],
        out_specs=pl.BlockSpec((tm, n_pad), lambda i: (i, 0)),
    )

    out = pl.pallas_call(
        _third_order_kernel,
        out_shape=jax.ShapeDtypeStruct((B, n_pad), out_dtype),
        grid_spec=grid_spec,
        compiler_params=pltpu.CompilerParams(
            # Batch tiles are independent -> sharded across TCs on v7x.
            dimension_semantics=("parallel",),
            # <= physical VMEM on every generation (v7x: 64 MiB physical).
            vmem_limit_bytes=32 * 1024 * 1024,
        ),
        cost_estimate=pl.CostEstimate(
            flops=flops, transcendentals=0, bytes_accessed=bytes_accessed),
    )(x_c, wh_t, wo_t)

    return out[:, :D_out] if n_pad != D_out else out


def reference_forward(x, w_hidden, w_output):
    """Pure-JAX mirror of the PyTorch module."""
    h = x @ w_hidden.T
    return (h ** 3) @ w_output.T


if __name__ == "__main__":
    # Small shapes consistent with ThirdOrderNet(D_in, H, D_out)
    D_in, H, D_out = 16, 32, 4
    batch = 32

    key = jax.random.PRNGKey(0)
    kx, k1, k2 = jax.random.split(key, 3)
    x = jax.random.normal(kx, (batch, D_in), dtype=jnp.float32)
    # torch nn.Linear weight layout: (out_features, in_features)
    w_hidden = (0.1 * jax.random.normal(k1, (H, D_in))).astype(jnp.float32)
    w_output = (0.1 * jax.random.normal(k2, (D_out, H))).astype(jnp.float32)

    y_ref = reference_forward(x, w_hidden, w_output)

    # f32 path; default tiling gives 2 batch tiles of 16 rows.
    y = third_order_forward(x, w_hidden, w_output)
    jax.block_until_ready(y)
    assert y.shape == (batch, D_out)
    np.testing.assert_allclose(np.asarray(y), np.asarray(y_ref),
                               rtol=1e-5, atol=1e-5)

    # Ragged final tile (B not a multiple of the tile): Pallas write-masking.
    xr = x[:27]
    yr = third_order_forward(xr, w_hidden, w_output)
    jax.block_until_ready(yr)
    np.testing.assert_allclose(np.asarray(yr), np.asarray(y_ref[:27]),
                               rtol=1e-5, atol=1e-5)

    # bf16 MXU feed (the v6e/v7x recommendation): f32 accumulation, f32 cube.
    # Cubing amplifies bf16 input rounding ~3x -> loose tolerance.
    yb = third_order_forward(x, w_hidden, w_output,
                             compute_dtype=jnp.bfloat16)
    jax.block_until_ready(yb)
    np.testing.assert_allclose(np.asarray(yb), np.asarray(y_ref),
                               rtol=1e-1, atol=2e-2)

    print("KERNEL_OK")
</pallas_src>

<mosaic_0001>
module attributes {stable_mosaic.version = 11 : i64} {
  func.func @_third_order_kernel(%arg0: i32, %arg1: memref<16x16xf32, #tpu.memory_space<vmem>>, %arg2: memref<16x32xf32, #tpu.memory_space<vmem>>, %arg3: memref<32x128xf32, #tpu.memory_space<vmem>>, %arg4: memref<16x128xf32, #tpu.memory_space<vmem>>) attributes {dimension_semantics = [#tpu.dimension_semantics<parallel>], iteration_bounds = array<i64: 2>, scalar_prefetch = 0 : i64, scratch_operands = 0 : i64, tpu.core_type = #tpu.core_type<tc>, window_params = [{transform_indices = @transform_0, window_bounds = array<i64: 16, 16>}, {pipeline_mode = #tpu.pipeline_mode<synchronous>, transform_indices = @transform_1, window_bounds = array<i64: 16, 32>}, {pipeline_mode = #tpu.pipeline_mode<synchronous>, transform_indices = @transform_2, window_bounds = array<i64: 32, 128>}, {transform_indices = @transform_3, window_bounds = array<i64: 16, 128>}]} {
    %c0 = arith.constant 0 : index
    %c0_0 = arith.constant 0 : index
    %0 = vector.load %arg1[%c0, %c0_0] : memref<16x16xf32, #tpu.memory_space<vmem>>, vector<16x16xf32>
    %c0_1 = arith.constant 0 : index
    %c0_2 = arith.constant 0 : index
    %1 = vector.load %arg2[%c0_1, %c0_2] : memref<16x32xf32, #tpu.memory_space<vmem>>, vector<16x32xf32>
    %cst = arith.constant dense<0.000000e+00> : vector<16x32xf32>
    %2 = tpu.matmul %0, %1, %cst {dimension_numbers = #tpu.dot_dimension_numbers<[1], [0], [0], [1], [0, 0, 1, 1], [], []>} : vector<16x16xf32>, vector<16x32xf32>, vector<16x32xf32> -> vector<16x32xf32>
    %3 = arith.mulf %2, %2 : vector<16x32xf32>
    %4 = arith.mulf %3, %2 : vector<16x32xf32>
    %c0_3 = arith.constant 0 : index
    %c0_4 = arith.constant 0 : index
    %5 = vector.load %arg3[%c0_3, %c0_4] : memref<32x128xf32, #tpu.memory_space<vmem>>, vector<32x128xf32>
    %cst_5 = arith.constant dense<0.000000e+00> : vector<16x128xf32>
    %6 = tpu.matmul %4, %5, %cst_5 {dimension_numbers = #tpu.dot_dimension_numbers<[1], [0], [0], [1], [0, 0, 1, 1], [], []>} : vector<16x32xf32>, vector<32x128xf32>, vector<16x128xf32> -> vector<16x128xf32>
    %c0_6 = arith.constant 0 : index
    %c0_7 = arith.constant 0 : index
    %7 = vector.load %arg4[%c0_6, %c0_7] : memref<16x128xf32, #tpu.memory_space<vmem>>, vector<16x128xf32>
    tpu.vector_store %arg4[%c0_6, %c0_7], %6 {strides = array<i32>} : memref<16x128xf32, #tpu.memory_space<vmem>>, vector<16x128xf32>,
    return
  }
  func.func @transform_0(%arg0: i32) -> (i32, i32) {
    %c0_i32 = arith.constant 0 : i32
    %c0_i32_0 = arith.constant 0 : i32
    return %arg0, %c0_i32 : i32, i32
  }
  func.func @transform_1(%arg0: i32) -> (i32, i32) {
    %c0_i32 = arith.constant 0 : i32
    %c0_i32_0 = arith.constant 0 : i32
    %c0_i32_1 = arith.constant 0 : i32
    return %c0_i32, %c0_i32_0 : i32, i32
  }
  func.func @transform_2(%arg0: i32) -> (i32, i32) {
    %c0_i32 = arith.constant 0 : i32
    %c0_i32_0 = arith.constant 0 : i32
    %c0_i32_1 = arith.constant 0 : i32
    return %c0_i32, %c0_i32_0 : i32, i32
  }
  func.func @transform_3(%arg0: i32) -> (i32, i32) {
    %c0_i32 = arith.constant 0 : i32
    %c0_i32_0 = arith.constant 0 : i32
    return %arg0, %c0_i32 : i32, i32
  }
}

</mosaic_0001>

<bundles_post_ra>
// kernel: third_order_forward.1
= control target key start
LH: loop header
LB: loop body
LE: loop exit
PB: predicated region body
PF: predicated region fallthrough
CT: control target
= control target key end

     0   :  { %s487_s12 = smov 0   ;;  %s529_s0 = inlined_call_operand.vmem [shape: f32[32,16], index: 0, kind: input, shape index: {}]   ;;  %s530_s1 = inlined_call_operand.vmem [shape: f32[16,32], index: 1, kind: input, shape index: {}]   ;;  %s531_s2 = inlined_call_operand.vmem [shape: f32[32,128], index: 2, kind: input, shape index: {}]   ;;  %s532_s3 = inlined_call_operand.vmem [shape: f32[32,128], index: 3, kind: output, shape index: {}]  }
   0x1 LB: > { %s408_s13 = sadd.s32 4294967295, %s465_s12   ;;  %p412_p0 = scmp.ge.s32.totalorder %s465_s12, 1  ;;  %s465_s12 = sphi %s487_s12, %s13_s12  }
   0x2   : > { %p138_p1 = scmp.lt.s32.totalorder %s465_s12, 3 }
   0x4   : > { %p139_p2 = pnand %p412_p0, %p138_p1 }
   0x5   : > { %s413_s18 = sshll.u32 (!%p139_p2), %s408_s13, 1 }
   0x6   : > { %142 = sbr.rel (%p139_p2) target bundleno = 412 (0x19c), region = 32  ;;  %p163_p3 = scmp.lt.s32.totalorder (!%p139_p2), %s413_s18, 3 }
   0xb   : > { %v177_v0 = vld [vmem:[%s530_s1 + $0x8] sm:$0xff]  ;;  %v176_v1 = vld [vmem:[%s530_s1] sm:$0xff]  ;;  %s534_s18 = smov (!%p163_p3, %s413_s18), 3  ;;  %vm178_vm0 = vcmask 130048   ;;  %v267_v4 = vld [vmem:[%s531_s2 + $0x18] sm:$0xff]  ;;  %vm268_vm1 = vcmask 261120  }
   0xc   : > { %433 = vmatprep.subr.mxu0 %v177_v0  ;;  %s414_s19 = sshll.u32 %s534_s18, 3  ;;  %440 = vmatprep.subr.mxu1 %v267_v4  ;;  %v266_v5 = vld [vmem:[%s531_s2 + $0x10] sm:$0xff]  ;;  %v265_v6 = vld [vmem:[%s531_s2 + $0x8] sm:$0xff]  ;;  %v264_v7 = vld [vmem:[%s531_s2] sm:$0xff] }
   0xd   : > { %434 = vmatpush3.msra.mxu0 %v177_v0  ;;  %s166_s22 = scalar_lea.vmem %s529_s0, %s414_s19  ;;  %441 = vmatpush3.msra.mxu1 %v267_v4  ;;  %s172_s6 = scalar_lea.vmem %s532_s3, %s414_s19 }
   0xe   : > { %435 = vmatprep.subr.mxu0 %v176_v1  ;;  %v174_v2 = vld [vmem:[%s166_s22] sm:$0xff]  ;;  %v175_v3 = vld [vmem:[%s166_s22 + $0x8] sm:$0xff]  ;;  %442 = vmatprep.subr.mxu1 %v266_v5 }
   0xf   : > { %436 = vmatpush3.msra.mxu0 %v176_v1  ;;  %437 = vmatprep.mubr.msk.f32.mxu0 %vm178_vm0, %v174_v2 }
  0x10   : > { %438 = vmatmul.mubr.msk.f32.vlgmr.msra.gmra.mxu0 %vm178_vm0, %v175_v3  ;;  %443 = vmatpush3.msra.mxu1 %v266_v5 }
  0x11   : > { %444 = vmatprep.subr.mxu1 %v265_v6 }
  0x12   : > { %445 = vmatpush3.msra.mxu1 %v265_v6 }
  0x13   : > { %446 = vmatprep.subr.mxu1 %v264_v7 }
  0x14   : > { %447 = vmatpush3.msra.mxu1 %v264_v7 }
  0xd0   : > { %v439_v8 = vpop.f32.mrf.mxu0 }
  0xd1   : > { %v261_v9 = vmul.f32 %v439_v8, %v439_v8 }
  0xd2   : > { %v251_v10 = vpop.f32.mrf.mxu0 }
  0xd3   : > { %v260_v11 = vmul.f32 %v251_v10, %v251_v10  ;;  %v263_v13 = vmul.f32 %v439_v8, %v261_v9 }
  0xd5   : > { %v262_v12 = vmul.f32 %v260_v11, %v251_v10 }
  0xd7   : > { %448 = vmatprep.mubr.msk.f32.mxu1 %vm268_vm1, %v262_v12 }
  0xd8   : > { %449 = vmatmul.mubr.msk.f32.vlgmr.msra.gmra.mxu1 %vm268_vm1, %v263_v13 }
 0x198   : > { %v450_v14 = vpop.f32.mrf.mxu1 }
 0x199   : > { %351 = vst [vmem:[%s172_s6 + $0x8] sm:$0xff] %v450_v14 }
 0x19a   : > { %v341_v15 = vpop.f32.mrf.mxu1 }
 0x19b   : > { %350 = vst [vmem:[%s172_s6] sm:$0xff] %v341_v15 }
 0x19c PF: > { %s13_s12 = sadd.s32 1, %s465_s12  }
 0x19d   : > { %p10_p4 = scmp.ge.s32.totalorder %s13_s12, 4  }
 0x19f   :  { %12 = sbr.rel (!%p10_p4) target bundleno = 1 (0x1), region = 62 }

</bundles_post_ra>
